<compile_context>
chip_gen: v7x
topology: tpu7x:2x2x1
jax: 0.10.0
libtpu: 0.0.40
codegen_flags: <defaults>
</compile_context>

<pallas_src>
import math

import jax
import jax.numpy as jnp
from jax.experimental import pallas as pl
from jax.experimental.pallas import tpu as pltpu


def _pca_kernel(xt_ref, w_ref, o_ref):
    """xt_ref: (1, K, TM), w_ref: (Cfin, K), o_ref: (1, Cfin, TM)."""
    xt = xt_ref[0]                                                   # (K, TM)
    w = w_ref[...]                                                   # (Cfin, K)
    # Single fused matmul: row 0 -> z_DC, rows 1..c -> z_AC, rows c+1.. -> -z_AC.
    z = jnp.dot(w, xt, preferred_element_type=jnp.float32)          # (Cfin, TM)
    row = jax.lax.broadcasted_iota(jnp.int32, z.shape, 0)
    # relu on all AC rows; the DC row (row 0) passes through unchanged.
    o_ref[0] = jnp.where(row == 0, z, jnp.maximum(z, 0.0)).astype(o_ref.dtype)


def _pick_tile_m(m_img):
    """Spatial (lane) tile size per grid step (multiple of 128 when tiled)."""
    if m_img <= 4096:
        return m_img
    for tm in (8192, 4096, 2048, 1024, 512, 256, 128):
        if m_img % tm == 0:
            return tm
    return 4096  # ragged edge: Pallas pads/masks the final block


def pca_forward(x_nchw, weight, zoom):
    """x_nchw: (N, Cin, H, W) f32, weight: (Cout, Cin, zoom, zoom) f32."""
    N, Cin, H, W = x_nchw.shape
    Cout = weight.shape[0]
    Ho, Wo = H // zoom, W // zoom
    K = Cin * zoom * zoom
    M_img = Ho * Wo
    c_keep = Cout - 1
    Cfin = 1 + 2 * c_keep
    inv_sqrt_nf = 1.0 / math.sqrt(K)

    # ---- Fold dc / upsample / mean-subtract / conv into one (Cfin, K) weight
    w_flat = weight.reshape(Cout, K).astype(jnp.float32)   # K ordered (Cin,kh,kw)
    w_dc = w_flat[-1]                                       # dc kernel, (K,)
    rowsum = jnp.sum(w_flat[:-1], axis=1)                   # (Cout-1,)
    # conv(x - upsample(z_dc/sqrt(K)))[c] == patch . (W[c] - rowsum[c]/sqrt(K)*w_dc)
    w_eff = w_flat[:-1] - inv_sqrt_nf * rowsum[:, None] * w_dc[None, :]
    w_full = jnp.concatenate([w_dc[None, :], w_eff, -w_eff], axis=0)  # (Cfin, K)

    # ---- NCHW -> (N, K, Ho*Wo) patch matrix with the spatial axis on lanes.
    # TODO(synk): this is still one XLA transpose pass over the (smaller) input;
    # a fully transpose-free variant needs an in-kernel (zoom, zoom) relayout.
    xt = x_nchw.reshape(N, Cin, Ho, zoom, Wo, zoom)
    xt = xt.transpose(0, 1, 3, 5, 2, 4).reshape(N, K, M_img)

    tm = _pick_tile_m(M_img)
    grid = (N, pl.cdiv(M_img, tm))

    out = pl.pallas_call(
        _pca_kernel,
        out_shape=jax.ShapeDtypeStruct((N, Cfin, M_img), jnp.float32),
        grid=grid,
        in_specs=[
            pl.BlockSpec((1, K, tm), lambda n, m: (n, 0, m)),
            pl.BlockSpec((Cfin, K), lambda n, m: (0, 0)),
        ],
        out_specs=pl.BlockSpec((1, Cfin, tm), lambda n, m: (n, 0, m)),
        compiler_params=pltpu.CompilerParams(
            dimension_semantics=("parallel", "parallel")),
        cost_estimate=pl.CostEstimate(
            flops=2 * N * M_img * K * Cfin,
            transcendentals=0,
            bytes_accessed=4 * (N * K * M_img + N * Cfin * M_img + Cfin * K)),
    )(xt, w_full)

    # Output already in (N, Cfin, Ho*Wo) order: final NCHW reshape is free.
    return out.reshape(N, Cfin, Ho, Wo)


def reference_forward(x, weight, zoom):
    """Pure-JAX reference mirroring the PyTorch module exactly (NCHW convs)."""
    n_feature = x.shape[1] * zoom * zoom
    dn = jax.lax.conv_dimension_numbers(
        x.shape, weight.shape, ("NCHW", "OIHW", "NCHW"))
    z_dc = jax.lax.conv_general_dilated(
        x, weight[-1:], (zoom, zoom), "VALID", dimension_numbers=dn)
    z_mean = jnp.repeat(
        jnp.repeat(z_dc / math.sqrt(n_feature), zoom, axis=2), zoom, axis=3)
    z_ac = jax.lax.conv_general_dilated(
        x - z_mean, weight, (zoom, zoom), "VALID", dimension_numbers=dn)
    z_ac = z_ac[:, :-1, :, :]
    a1 = jnp.maximum(z_ac, 0.0)
    a2 = jnp.maximum(-z_ac, 0.0)
    return jnp.concatenate([z_dc, a1, a2], axis=1)


if __name__ == "__main__":
    key = jax.random.PRNGKey(0)
    N, Cin, H, W = 2, 4, 16, 16
    zoom = 2
    Cout = Cin * zoom * zoom  # full PCA basis: Cout == n_feature == 16

    kx, kw = jax.random.split(key)
    x = jax.random.normal(kx, (N, Cin, H, W), dtype=jnp.float32)
    # Deterministic synthetic "PCA" weight with the Conv2d weight shape.
    weight = jax.random.normal(kw, (Cout, Cin, zoom, zoom), dtype=jnp.float32)

    out = pca_forward(x, weight, zoom)
    out = jax.block_until_ready(out)

    ref = reference_forward(x, weight, zoom)
    assert out.shape == (N, 1 + 2 * (Cout - 1), H // zoom, W // zoom)
    assert jnp.allclose(out, ref, atol=2e-3, rtol=2e-3), "mismatch vs reference"

    print("KERNEL_OK")
</pallas_src>

<mosaic_0001>
module attributes {stable_mosaic.version = 11 : i64} {
  func.func @_pca_kernel(%arg0: i32, %arg1: i32, %arg2: memref<1x16x64xf32, #tpu.memory_space<vmem>>, %arg3: memref<31x16xf32, #tpu.memory_space<vmem>>, %arg4: memref<1x31x64xf32, #tpu.memory_space<vmem>>) attributes {dimension_semantics = [#tpu.dimension_semantics<parallel>, #tpu.dimension_semantics<parallel>], iteration_bounds = array<i64: 2, 1>, scalar_prefetch = 0 : i64, scratch_operands = 0 : i64, tpu.core_type = #tpu.core_type<tc>, window_params = [{transform_indices = @transform_0, window_bounds = array<i64: 1, 16, 64>}, {pipeline_mode = #tpu.pipeline_mode<synchronous>, transform_indices = @transform_1, window_bounds = array<i64: 31, 16>}, {transform_indices = @transform_2, window_bounds = array<i64: 1, 31, 64>}]} {
    %c0 = arith.constant 0 : index
    %c0_0 = arith.constant 0 : index
    %c0_1 = arith.constant 0 : index
    %0 = vector.load %arg2[%c0, %c0_0, %c0_1] : memref<1x16x64xf32, #tpu.memory_space<vmem>>, vector<1x16x64xf32>
    %1 = vector.shape_cast %0 : vector<1x16x64xf32> to vector<16x64xf32>
    %c0_2 = arith.constant 0 : index
    %c0_3 = arith.constant 0 : index
    %2 = vector.load %arg3[%c0_2, %c0_3] : memref<31x16xf32, #tpu.memory_space<vmem>>, vector<31x16xf32>
    %cst = arith.constant dense<0.000000e+00> : vector<31x64xf32>
    %3 = tpu.matmul %2, %1, %cst {dimension_numbers = #tpu.dot_dimension_numbers<[1], [0], [0], [1], [0, 0, 1, 1], [], []>} : vector<31x16xf32>, vector<16x64xf32>, vector<31x64xf32> -> vector<31x64xf32>
    %4 = tpu.iota {dimensions = array<i32: 0>} : vector<31x64xi32>
    %c0_i32 = arith.constant 0 : i32
    %5 = vector.broadcast %c0_i32 : i32 to vector<31x64xi32>
    %6 = arith.cmpi eq, %4, %5 : vector<31x64xi32>
    %cst_4 = arith.constant 0.000000e+00 : f32
    %7 = vector.broadcast %cst_4 : f32 to vector<31x64xf32>
    %8 = arith.maximumf %3, %7 : vector<31x64xf32>
    %9 = arith.select %6, %3, %8 : vector<31x64xi1>, vector<31x64xf32>
    %c0_5 = arith.constant 0 : index
    %c0_6 = arith.constant 0 : index
    %c0_7 = arith.constant 0 : index
    %10 = vector.load %arg4[%c0_5, %c0_6, %c0_7] : memref<1x31x64xf32, #tpu.memory_space<vmem>>, vector<1x31x64xf32>
    %11 = vector.shape_cast %10 : vector<1x31x64xf32> to vector<31x64xf32>
    %12 = vector.shape_cast %9 : vector<31x64xf32> to vector<1x31x64xf32>
    tpu.vector_store %arg4[%c0_5, %c0_6, %c0_7], %12 {strides = array<i32>} : memref<1x31x64xf32, #tpu.memory_space<vmem>>, vector<1x31x64xf32>,
    return
  }
  func.func @transform_0(%arg0: i32, %arg1: i32) -> (i32, i32, i32) {
    %c0_i32 = arith.constant 0 : i32
    %c0_i32_0 = arith.constant 0 : i32
    return %arg0, %c0_i32, %arg1 : i32, i32, i32
  }
  func.func @transform_1(%arg0: i32, %arg1: i32) -> (i32, i32) {
    %c0_i32 = arith.constant 0 : i32
    %c0_i32_0 = arith.constant 0 : i32
    %c0_i32_1 = arith.constant 0 : i32
    return %c0_i32, %c0_i32_0 : i32, i32
  }
  func.func @transform_2(%arg0: i32, %arg1: i32) -> (i32, i32, i32) {
    %c0_i32 = arith.constant 0 : i32
    %c0_i32_0 = arith.constant 0 : i32
    return %arg0, %c0_i32, %arg1 : i32, i32, i32
  }
}

</mosaic_0001>

<bundles_post_ra>
// kernel: tpu_custom_call.1
= control target key start
LH: loop header
LB: loop body
LE: loop exit
PB: predicated region body
PF: predicated region fallthrough
CT: control target
= control target key end

     0   :  { %s487_s9 = smov 0   ;;  %s489_s10 = smov 0   ;;  %s536_s0 = inlined_call_operand.vmem [shape: f32[2,16,64], index: 0, kind: input, shape index: {}]   ;;  %s537_s1 = inlined_call_operand.vmem [shape: f32[31,16], index: 1, kind: input, shape index: {}]   ;;  %s538_s2 = inlined_call_operand.vmem [shape: f32[2,31,64], index: 2, kind: output, shape index: {}]  }
   0x1   :  { %s491_s11 = smov 0  }
   0x2 LB: > { %s24_s12 = sadd.s32 1, %s466_s10  ;;  %p389_p0 = scmp.ge.s32.totalorder %s470_s11, 1  ;;  %s470_s11 = sphi %s491_s11, %s12_s11   ;;  %s466_s10 = sphi %s489_s10, %s540_s10   ;;  %s462_s9 = sphi %s487_s9, %s539_s9  }
   0x3   : > { %p26_p1 = scmp.ge.s32.totalorder %s24_s12, 2  ;;  %p131_p2 = scmp.lt.s32.totalorder %s470_s11, 3 }
   0x5   : > { %s542_s12 = smov (%p26_p1, %s24_s12), 0  ;;  %p132_p3 = pnand %p389_p0, %p131_p2 }
   0x6   : > { %p159_p4 = scmp.lt.s32.totalorder (!%p132_p3), %s462_s9, 1  ;;  %v177_v0 = vld [vmem:[%s537_s1] sm:$0xff] (!%p132_p3)  ;;  %vm181_vm0 = vcmask (!%p132_p3), 130048   ;;  %v179_v1 = vld [vmem:[%s537_s1 + $0x10] sm:$0xff] (!%p132_p3)  ;;  %v178_v5 = vld [vmem:[%s537_s1 + $0x8] sm:$0xff] (!%p132_p3)  ;;  %v279_v7 = vlaneseq (!%p132_p3)  ;;  %vm296_vm1 = vcmask (!%p132_p3), 523264  }
   0x7   : > { %135 = sbr.rel (%p132_p3) target bundleno = 241 (0xf1), region = 28  ;;  %412 = vmatprep.mubr.msk.f32.mxu0 (!%p132_p3), %vm181_vm0, %v177_v0  ;;  %415 = vmatprep.mubr.msk.f32.mxu1 (!%p132_p3), %vm181_vm0, %v179_v1  ;;  %v180_v6 = vld [vmem:[%s537_s1 + $0x18] sm:$0x7f] (!%p132_p3)  ;;  %vm300_vm2 = vcmask (!%p132_p3), 522240  }
   0x8   : > { %v280_v8 = vshrl.u32 (!%p132_p3), %v279_v7, 7 }
   0xa   : > { %vm284_vm3 = vcmp.eq.s32.totalorder (!%p132_p3), %v280_v8, 0 }
   0xe   : > { %s544_s9 = smov (!%p159_p4, %s462_s9), 1 }
   0xf   : > { %s400_s17 = sshll.u32 %s544_s9, 4  ;;  %s401_s25 = sshll.u32 %s544_s9, 5 }
  0x10   : > { %s166_s20 = scalar_lea.vmem %s536_s0, %s400_s17  ;;  %s174_s28 = scalar_lea.vmem %s538_s2, %s401_s25 }
  0x11   : > { %v175_v2 = vld [vmem:[%s166_s20] sm:$0xff]  ;;  %v176_v3 = vld [vmem:[%s166_s20 + $0x8] sm:$0xff] }
  0x12   : > { %v418_v4 = vpack.c.bf16 %v176_v3, %v175_v2 }
  0x14   : > { %419 = vmatprep.subr.bf16.mxu0 %v418_v4  ;;  %422 = vmatprep.subr.bf16.mxu1 %v418_v4 }
  0x15   : > { %421 = vmatpush3.bf16.msra.mxu0 %v418_v4  ;;  %423 = vmatpush3.bf16.msra.mxu1 %v418_v4 }
  0x18   : > { %413 = vmatmul.mubr.msk.f32.vlgmr.msra.gmra.mrb[0].mxu0 %vm181_vm0, %v178_v5  ;;  %416 = vmatmul.mubr.msk.f32.vlgmr.msra.gmra.mrb[0].mxu1 %vm181_vm0, %v180_v6 }
  0xeb   : > { %v414_v9 = vpop.f32.mrb[0].mxu0  ;;  %v417_v10 = vpop.f32.mrb[0].mxu1 }
  0xec   : > { %v289_v11 = vmax.f32 %v414_v9, 0.0  ;;  %v291_v12 = vmax.f32 %v417_v10, 0.0  ;;  %v260_v13 = vpop.f32.mrb[1].mxu0  ;;  %v270_v14 = vpop.f32.mrb[1].mxu1 }
  0xed   : > { %v288_v15 = vmax.f32 %v260_v13, 0.0  ;;  %v290_v16 = vmax.f32 %v270_v14, 0.0 }
  0xee   : > { %298 = vst.msk [vmem:[%s174_s28 + $0x8] sm:$0xff] %vm296_vm1, %v289_v11 }
  0xef   : > { %301 = vst.msk [vmem:[%s174_s28 + $0x18] sm:$0x7f] %vm300_vm2, %v291_v12  ;;  %v292_v17 = vsel %vm284_vm3, %v260_v13, %v288_v15 }
  0xf0   : > { %299 = vst.msk [vmem:[%s174_s28 + $0x10] sm:$0xff] %vm296_vm1, %v290_v16  ;;  %297 = vst.msk [vmem:[%s174_s28] sm:$0xff] %vm296_vm1, %v292_v17 }
  0xf1 PF: > { %s12_s11 = sadd.s32 1, %s470_s11   ;;  %s539_s9 = smov %s466_s10 }
  0xf2   : > { %p9_p5 = scmp.ge.s32.totalorder %s12_s11, 4   ;;  %s540_s10 = smov %s542_s12 }
  0xf4   :  { %11 = sbr.rel (!%p9_p5) target bundleno = 2 (0x2), region = 58 }

</bundles_post_ra>
